<compile_context>
chip_gen: v6e
topology: v6e:2x2x1
jax: 0.10.0
libtpu: 0.0.40
codegen_flags: <defaults>
</compile_context>

<pallas_src>
import jax
import jax.numpy as jnp
from jax import lax
from jax.experimental import pallas as pl
from jax.experimental.pallas import tpu as pltpu


def _round_up(x, m):
    return ((x + m - 1) // m) * m


def _vmem_capacity_bytes():
    try:
        return int(pltpu.get_tpu_info().vmem_capacity_bytes)
    except Exception:
        return 64 << 20  # conservative (v7x-sized) fallback


def _pick_hw_tile(hw, cap):
    """Pick a multiple-of-128 lane tile <= cap with minimal padding."""
    cap = max(128, (cap // 128) * 128)
    hw128 = pl.cdiv(hw, 128) * 128
    if hw128 <= cap:
        return hw128                      # single tile per image, pad < 128 lanes
    if hw % 128 == 0:
        t = cap
        while t >= 512:                   # prefer an exact multiple-of-128 divisor
            if hw % t == 0:
                return t
            t -= 128
    n = pl.cdiv(hw, cap)                  # otherwise keep total pad ~<= n*128 lanes
    return pl.cdiv(pl.cdiv(hw, n), 128) * 128


def _make_kernel(n_cc, tcout):
    if n_cc <= 1:
        def kernel(x_ref, w_ref, s_ref, b_ref, o_ref):
            # x_ref: (Cin, thw)  w_ref: (Cout, Cin)  s_ref/b_ref: (Cout, 1) f32
            y = jnp.dot(w_ref[...], x_ref[...], preferred_element_type=jnp.float32)
            y = y * s_ref[...] + b_ref[...]
            o_ref[...] = jnp.maximum(y, 0.0).astype(o_ref.dtype)
    else:
        def kernel(x_ref, w_ref, s_ref, b_ref, o_ref):
            x = x_ref[...]                # loaded once, reused across Cout chunks

            def body(c, carry):
                off = pl.multiple_of(c * tcout, tcout)
                y = jnp.dot(w_ref[pl.ds(off, tcout), :], x,
                            preferred_element_type=jnp.float32)
                y = y * s_ref[pl.ds(off, tcout), :] + b_ref[pl.ds(off, tcout), :]
                o_ref[pl.ds(off, tcout), :] = jnp.maximum(y, 0.0).astype(o_ref.dtype)
                return carry

            lax.fori_loop(0, n_cc, body, 0)
    return kernel


def conv1x1_bn_relu(x_nchw, weight, gamma, beta, running_mean, running_var,
                    eps=1e-5):
    """x_nchw: (N, Cin, H, W); weight: (Cout, Cin, 1, 1) (PyTorch conv layout)."""
    N, Cin, H, W = x_nchw.shape
    Cout = weight.shape[0]
    HW = H * W
    in_dtype = x_nchw.dtype
    itemsize = jnp.dtype(in_dtype).itemsize

    # Eval-mode BN as a per-channel affine applied in f32 on the accumulator.
    scale = gamma.astype(jnp.float32) / jnp.sqrt(running_var.astype(jnp.float32) + eps)
    bias = beta.astype(jnp.float32) - running_mean.astype(jnp.float32) * scale
    scale2d = scale.reshape(Cout, 1)
    bias2d = bias.reshape(Cout, 1)
    w_mat = weight.reshape(Cout, Cin).astype(in_dtype)

    # Free view: (N, Cin, H*W) -- H*W on the lane axis.
    x = x_nchw.reshape(N, Cin, HW)

    # In-kernel Cout chunking for large channel counts (bounds the f32 slab).
    tcout, n_cc = Cout, 1
    if Cout >= 512 and Cout % 256 == 0:
        tcout, n_cc = 256, Cout // 256

    # Chip-aware VMEM budget / tile sizing.
    vmem_cap = _vmem_capacity_bytes()
    cin_pad = _round_up(max(Cin, 1), 8)
    cout_pad = _round_up(max(Cout, 1), 8)
    per_lane = (2 * cin_pad + 2 * cout_pad) * itemsize + _round_up(tcout, 8) * 4
    fixed = (2 * cout_pad * _round_up(Cin, 128) * itemsize   # weight (dbl-buffered)
             + 2 * 2 * cout_pad * 128 * 4)                   # scale + bias (f32)
    budget = int(vmem_cap * 0.7)
    max_thw = 4096 if vmem_cap >= (100 << 20) else 2048      # v5e/v6e vs v7x
    thw_cap = max(128, min(max_thw, ((budget - fixed) // per_lane) // 128 * 128))
    thw = _pick_hw_tile(HW, thw_cap)

    # Guarantee >=2 parallel grid steps so both v7x TensorCores get work.
    n_hw = pl.cdiv(HW, thw)
    if N * n_hw < 2 and thw > 128:
        thw = pl.cdiv(pl.cdiv(HW, 2), 128) * 128
        n_hw = pl.cdiv(HW, thw)

    grid = (N, n_hw)

    needed = fixed + per_lane * thw
    vmem_limit = int(min(max(needed * 1.2, 16 << 20), vmem_cap * 0.85))

    hw_eff = n_hw * thw  # actual streamed lanes (includes the <=tile padding)
    cost = pl.CostEstimate(
        flops=2 * N * hw_eff * Cin * Cout,
        transcendentals=0,
        bytes_accessed=(N * Cin * hw_eff + N * Cout * hw_eff) * itemsize
                       + Cout * Cin * itemsize + 2 * Cout * 4,
    )

    out = pl.pallas_call(
        _make_kernel(n_cc, tcout),
        out_shape=jax.ShapeDtypeStruct((N, Cout, HW), in_dtype),  # exact HW: no pad/slice
        grid_spec=pltpu.PrefetchScalarGridSpec(
            num_scalar_prefetch=0,
            grid=grid,
            in_specs=[
                pl.BlockSpec((pl.Squeezed(), Cin, thw), lambda n, j: (n, 0, j)),
                pl.BlockSpec((Cout, Cin), lambda n, j: (0, 0)),
                pl.BlockSpec((Cout, 1), lambda n, j: (0, 0)),
                pl.BlockSpec((Cout, 1), lambda n, j: (0, 0)),
            ],
            out_specs=pl.BlockSpec((pl.Squeezed(), Cout, thw),
                                   lambda n, j: (n, 0, j)),
        ),
        compiler_params=pltpu.CompilerParams(
            dimension_semantics=("parallel", "parallel"),
            vmem_limit_bytes=vmem_limit),
        cost_estimate=cost,
    )(x, w_mat, scale2d, bias2d)

    return out.reshape(N, Cout, H, W)


def _reference(x_nchw, weight, gamma, beta, running_mean, running_var, eps=1e-5):
    Cout, Cin = weight.shape[0], weight.shape[1]
    w_mat = weight.reshape(Cout, Cin)
    y = jnp.einsum('nchw,oc->nohw', x_nchw, w_mat)
    scale = gamma / jnp.sqrt(running_var + eps)
    bias = beta - running_mean * scale
    y = y * scale[None, :, None, None] + bias[None, :, None, None]
    return jnp.maximum(y, 0.0)


if __name__ == "__main__":
    key = jax.random.PRNGKey(0)
    N, Cin, Cout, Hs, Ws = 2, 4, 8, 16, 16

    k_x, k_w, k_g, k_b, k_m, k_v = jax.random.split(key, 6)
    x = jax.random.normal(k_x, (N, Cin, Hs, Ws), dtype=jnp.float32)
    weight = jax.random.normal(k_w, (Cout, Cin, 1, 1), dtype=jnp.float32) * 0.1
    gamma = 1.0 + 0.1 * jax.random.normal(k_g, (Cout,), dtype=jnp.float32)
    beta = 0.1 * jax.random.normal(k_b, (Cout,), dtype=jnp.float32)
    running_mean = 0.05 * jax.random.normal(k_m, (Cout,), dtype=jnp.float32)
    running_var = jnp.abs(1.0 + 0.1 * jax.random.normal(k_v, (Cout,), dtype=jnp.float32))

    out = conv1x1_bn_relu(x, weight, gamma, beta, running_mean, running_var)
    out = jax.block_until_ready(out)

    ref = _reference(x, weight, gamma, beta, running_mean, running_var)
    assert out.shape == (N, Cout, Hs, Ws)
    assert out.dtype == x.dtype
    assert jnp.allclose(out, ref, atol=1e-4, rtol=1e-4), "mismatch vs reference"

    print("KERNEL_OK")
</pallas_src>

<mosaic_0001>
module attributes {stable_mosaic.version = 11 : i64} {
  func.func @kernel(%arg0: i32, %arg1: i32, %arg2: memref<1x4x256xf32, #tpu.memory_space<vmem>>, %arg3: memref<8x4xf32, #tpu.memory_space<vmem>>, %arg4: memref<8x1xf32, #tpu.memory_space<vmem>>, %arg5: memref<8x1xf32, #tpu.memory_space<vmem>>, %arg6: memref<1x8x256xf32, #tpu.memory_space<vmem>>) attributes {dimension_semantics = [#tpu.dimension_semantics<parallel>, #tpu.dimension_semantics<parallel>], iteration_bounds = array<i64: 2, 1>, scalar_prefetch = 0 : i64, scratch_operands = 0 : i64, tpu.core_type = #tpu.core_type<tc>, window_params = [{transform_indices = @transform_0, window_bounds = array<i64: 1, 4, 256>}, {pipeline_mode = #tpu.pipeline_mode<synchronous>, transform_indices = @transform_1, window_bounds = array<i64: 8, 4>}, {pipeline_mode = #tpu.pipeline_mode<synchronous>, transform_indices = @transform_2, window_bounds = array<i64: 8, 1>}, {pipeline_mode = #tpu.pipeline_mode<synchronous>, transform_indices = @transform_3, window_bounds = array<i64: 8, 1>}, {transform_indices = @transform_4, window_bounds = array<i64: 1, 8, 256>}]} {
    %c0 = arith.constant 0 : index
    %c0_0 = arith.constant 0 : index
    %0 = vector.load %arg3[%c0, %c0_0] : memref<8x4xf32, #tpu.memory_space<vmem>>, vector<8x4xf32>
    %c0_1 = arith.constant 0 : index
    %c0_2 = arith.constant 0 : index
    %c0_3 = arith.constant 0 : index
    %1 = vector.load %arg2[%c0_1, %c0_2, %c0_3] : memref<1x4x256xf32, #tpu.memory_space<vmem>>, vector<1x4x256xf32>
    %2 = vector.shape_cast %1 : vector<1x4x256xf32> to vector<4x256xf32>
    %cst = arith.constant dense<0.000000e+00> : vector<8x256xf32>
    %3 = tpu.matmul %0, %2, %cst {dimension_numbers = #tpu.dot_dimension_numbers<[1], [0], [0], [1], [0, 0, 1, 1], [], []>} : vector<8x4xf32>, vector<4x256xf32>, vector<8x256xf32> -> vector<8x256xf32>
    %c0_4 = arith.constant 0 : index
    %c0_5 = arith.constant 0 : index
    %4 = vector.load %arg4[%c0_4, %c0_5] : memref<8x1xf32, #tpu.memory_space<vmem>>, vector<8x1xf32>
    %5 = vector.broadcast %4 : vector<8x1xf32> to vector<8x256xf32>
    %6 = arith.mulf %3, %5 : vector<8x256xf32>
    %c0_6 = arith.constant 0 : index
    %c0_7 = arith.constant 0 : index
    %7 = vector.load %arg5[%c0_6, %c0_7] : memref<8x1xf32, #tpu.memory_space<vmem>>, vector<8x1xf32>
    %8 = vector.broadcast %7 : vector<8x1xf32> to vector<8x256xf32>
    %9 = arith.addf %6, %8 : vector<8x256xf32>
    %cst_8 = arith.constant 0.000000e+00 : f32
    %10 = vector.broadcast %cst_8 : f32 to vector<8x256xf32>
    %11 = arith.maximumf %9, %10 : vector<8x256xf32>
    %c0_9 = arith.constant 0 : index
    %c0_10 = arith.constant 0 : index
    %c0_11 = arith.constant 0 : index
    %12 = vector.load %arg6[%c0_9, %c0_10, %c0_11] : memref<1x8x256xf32, #tpu.memory_space<vmem>>, vector<1x8x256xf32>
    %13 = vector.shape_cast %12 : vector<1x8x256xf32> to vector<8x256xf32>
    %14 = vector.shape_cast %11 : vector<8x256xf32> to vector<1x8x256xf32>
    tpu.vector_store %arg6[%c0_9, %c0_10, %c0_11], %14 {strides = array<i32>} : memref<1x8x256xf32, #tpu.memory_space<vmem>>, vector<1x8x256xf32>,
    return
  }
  func.func @transform_0(%arg0: i32, %arg1: i32) -> (i32, i32, i32) {
    %c0_i32 = arith.constant 0 : i32
    %c0_i32_0 = arith.constant 0 : i32
    return %arg0, %c0_i32, %arg1 : i32, i32, i32
  }
  func.func @transform_1(%arg0: i32, %arg1: i32) -> (i32, i32) {
    %c0_i32 = arith.constant 0 : i32
    %c0_i32_0 = arith.constant 0 : i32
    %c0_i32_1 = arith.constant 0 : i32
    return %c0_i32, %c0_i32_0 : i32, i32
  }
  func.func @transform_2(%arg0: i32, %arg1: i32) -> (i32, i32) {
    %c0_i32 = arith.constant 0 : i32
    %c0_i32_0 = arith.constant 0 : i32
    %c0_i32_1 = arith.constant 0 : i32
    return %c0_i32, %c0_i32_0 : i32, i32
  }
  func.func @transform_3(%arg0: i32, %arg1: i32) -> (i32, i32) {
    %c0_i32 = arith.constant 0 : i32
    %c0_i32_0 = arith.constant 0 : i32
    %c0_i32_1 = arith.constant 0 : i32
    return %c0_i32, %c0_i32_0 : i32, i32
  }
  func.func @transform_4(%arg0: i32, %arg1: i32) -> (i32, i32, i32) {
    %c0_i32 = arith.constant 0 : i32
    %c0_i32_0 = arith.constant 0 : i32
    return %arg0, %c0_i32, %arg1 : i32, i32, i32
  }
}

</mosaic_0001>

<bundles_post_ra>
// kernel: tpu_custom_call.1
= control target key start
LH: loop header
LB: loop body
LE: loop exit
PB: predicated region body
PF: predicated region fallthrough
CT: control target
= control target key end

     0   :  { %9 = vsyncpa [#allocation3], 0  ;;  %s715_s0 = inlined_call_operand.vmem [shape: f32[2,4,256], index: 0, kind: input, shape index: {}]   ;;  %s716_s1 = inlined_call_operand.vmem [shape: f32[8,4], index: 1, kind: input, shape index: {}]   ;;  %s717_s2 = inlined_call_operand.vmem [shape: f32[8,1], index: 2, kind: input, shape index: {}]   ;;  %s718_s3 = inlined_call_operand.vmem [shape: f32[8,1], index: 3, kind: input, shape index: {}]   ;;  %s719_s4 = inlined_call_operand.hbm [shape: f32[2,8,256], index: 4, kind: output, shape index: {}]  }
   0x1   :  { %11 = vsyncpa [#allocation3 + $0x1], 0  ;;  %s607_s15 = smov 0   ;;  %s609_s16 = smov 0  }
   0x2   :  { %s611_s17 = smov 0   ;;  %s613_s18 = smov 0  }
   0x3   :  { %s615_s19 = smov 0   ;;  %s617_s20 = smov 0  }
   0x4 LB: > { %s424_s21 = sadd.s32 4294967295, %s577_s20   ;;  %s425_s22 = sadd.s32 4294967294, %s577_s20   ;;  %s577_s20 = sphi %s617_s20, %s17_s20   ;;  %s573_s19 = sphi %s615_s19, %s726_s19   ;;  %s569_s18 = sphi %s613_s18, %s725_s18   ;;  %s565_s17 = sphi %s611_s17, %s724_s17   ;;  %s561_s16 = sphi %s609_s16, %s723_s16   ;;  %s557_s15 = sphi %s607_s15, %s722_s15  }
   0x5   : > { %s29_s23 = sadd.s32 1, %s573_s19  ;;  %s129_s24 = sadd.s32 1, %s565_s17 }
   0x6   : > { %p31_p0 = scmp.ge.s32.totalorder %s29_s23, 2  ;;  %p139_p1 = scmp.ne.s32.totalorder %s565_s17, %s561_s16 }
   0x7   : > { %p140_p2 = scmp.eq.s32.totalorder %s424_s21, 1  ;;  %p145_p3 = scmp.ne.s32.totalorder %s561_s16, %s557_s15 }
   0x8   : > { %s728_s23 = smov (%p31_p0, %s29_s23), 0  ;;  %p146_p5 = scmp.eq.s32.totalorder %s425_s22, 1 }
   0x9   : > { %p647_p4 = por %p140_p2, %p139_p1  ;;  %s124_s26 = ssub.s32 %s573_s19, %s728_s23 }
   0xa   : > { %p428_p6 = scmp.ge.s32.totalorder %s577_s20, 1  ;;  %p127_p7 = scmp.eq.s32.totalorder %s124_s26, 0 }
   0xb   : > { %p654_p8 = por %p146_p5, %p145_p3  ;;  %p186_p9 = scmp.lt.s32.totalorder %s577_s20, 3 }
   0xc   : > { %s660_s28 = scalar_select %p127_p7, %s565_s17, %s129_s24  }
   0xd   : > { %p187_p10 = pnand %p428_p6, %p186_p9 }
   0xe   : > { %p217_p11 = scmp.lt.s32.totalorder (!%p187_p10), %s569_s18, 1  ;;  %s213_s14 = sand.u32 (!%p187_p10), 1, %s561_s16  }
   0xf   : > { %190 = sbr.rel (%p187_p10) target bundleno = 243 (0xf3), region = 36  ;;  %s429_s21 = sshll.u32 (!%p187_p10), %s213_s14, 4 }
  0x10   : > { %s441_s22 = sshll.u32 (!%p187_p10), %s569_s18, 8  ;;  %s215_s24 = scalar_lea.vmem (!%p187_p10), [#allocation2], %s429_s21 }
  0x11   : > { %s348_s26 = sshll.u32 (!%p187_p10), %s215_s24, 4  ;;  %s332_s6 = scalar_lea.sflag (!%p187_p10), [#allocation3], %s213_s14  ;;  %s349_s26 = int_to_ptr.vmem [resolvable:$true] %s348_s26 }
  0x12   : > { %s501_s7 = scalar_lea.vmem (!%p187_p10), %s349_s26, 256 }
  0x13   : > { %p502_p12 = scmp.ne.s32.totalorder (!%p187_p10), %s349_s26, %s501_s7 }
  0x14   : > { %v579_v0 = vmov 0.0   ;;  %v580_v1 = vmov 0   ;;  %v311_v2 = vld [vmem:[%s717_s2] sm:$0xff]  ;;  %s218_s5 = scalar_select %p217_p11, %s569_s18, 1  ;;  %vm235_vm0 = vcmask 1043456   ;;  %vm231_vm1 = vcmask 31744  }
  0x15   : > { %304 = vmatprep.mubr.f32.mxu0 %v579_v0  ;;  %499 = vset.pattern.permute.xlu0 %v580_v1  ;;  %v319_v3 = vld [vmem:[%s718_s3] sm:$0xff]  ;;  %p503_p13 = pnand %p502_p12, %p647_p4 }
  0x16   : > { %314 = vperm.xlu0 %499, %v311_v2   ;;  %s440_s8 = sshll.u32 %s218_s5, 3  ;;  %v227_v6 = vld [vmem:[%s716_s1] sm:$0xff]  ;;  %s346_s5 = scalar_lea.hbm %s719_s4, %s441_s22 }
  0x17   : > { %s224_s11 = scalar_lea.vmem %s715_s0, %s440_s8  ;;  %p504_p0 = pneg %p503_p13 }
  0x18   : > { %v228_v4 = vld [vmem:[%s224_s11] sm:$0xff]  ;;  %s581_s8 = smov [#allocation2]  }
  0x19   : > { %v230_v5 = vcombine.high %v228_v4, %v228_v4  ;;  %s505_s18 = sshll.u32 %s581_s8, 4  ;;  %s506_s18 = int_to_ptr.vmem [resolvable:$false] %s505_s18 }
  0x1a   : > { %322 = vperm.xlu0 %499, %v319_v3   ;;  %s507_s9 = scalar_lea.vmem %s506_s18, 512  ;;  %p508_p1 = scmp.lt.s32.totalorder %s349_s26, %s506_s18 }
  0x1b   : > { %432 = vmatprep.subr.msk.mxu0 %vm235_vm0, %v230_v5  ;;  %p509_p2 = scmp.lt.s32.totalorder %s507_s9, %s501_s7 }
  0x1c   : > { %433 = vmatpush1.msk.msra.mxu0 %vm235_vm0, %v228_v4 }
  0x1d   : > { %434 = vmatmul.mubr.msk.f32.vlgmr.msra.gmra.mxu0 %vm231_vm1, %v227_v6  ;;  %p510_p3 = por %p509_p2, %p508_p1 }
  0x1f   : > { %p511_p5 = pnand %p510_p3, %p504_p0 }
  0x91   : > { %v315_v7 = vpop.permute.xlu0 %314 }
  0x95   : > { %v323_v10 = vpop.permute.xlu0 %322 }
  0xdd   : > { %v306_v8 = vpop.f32.mrf.mxu0 }
  0xde   : > { %v317_v9 = vmul.f32 %v315_v7, %v306_v8 }
  0xdf   : > { %v308_v11 = vpop.f32.mrf.mxu0 }
  0xe0   : > { %v325_v12 = vadd.f32 %v323_v10, %v317_v9  ;;  %v318_v13 = vmul.f32 %v315_v7, %v308_v11 }
  0xe2   : > { %v327_v14 = vmax.f32 %v325_v12, 0.0  ;;  %v326_v15 = vadd.f32 %v323_v10, %v318_v13 }
  0xe4   : > { %329 = vst [vmem:[%s215_s24] sm:$0xff] %v327_v14  ;;  %v328_v16 = vmax.f32 %v326_v15, 0.0 }
  0xe6   : > { %330 = vst [vmem:[%s215_s24 + $0x8] sm:$0xff] %v328_v16 }
  0xe7   : > { %514 = shalt.err (!%p511_p5)
}
  0xe8   : > { %s515_s10 = scalar_lea.hbm %s346_s5, 256  ;;  %s519_s13 = scalar_lea.hbm %s719_s4, 512 }
  0xe9   : > { %p516_p6 = scmp.ne.s32.totalorder %s346_s5, %s515_s10  ;;  %p520_p10 = scmp.lt.s32.totalorder %s346_s5, %s719_s4 }
  0xea   : > { %p521_p11 = scmp.lt.s32.totalorder %s519_s13, %s515_s10 }
  0xeb   : > { %p517_p7 = pnand %p516_p6, %p647_p4 }
  0xec   : > { %p522_p12 = por %p521_p11, %p520_p10 }
  0xed   : > { %p518_p9 = pneg %p517_p7 }
  0xef   : > { %p523_p13 = pnand %p522_p12, %p518_p9 }
  0xf1   : > { %526 = shalt.err (!%p523_p13)
}
  0xf2   : > { %442 = dma.vmem_to_hbm [thread:$0]  (%p647_p4), %s349_s26, 256, %s346_s5, %s332_s6  }
  0xf3 PF: > { %p448_p0 = scmp.ge.s32.totalorder %s577_s20, 2  ;;  %s360_s22 = sand.u32 1, %s557_s15  }
  0xf4   : > { %s361_s24 = scalar_lea.sflag [#allocation3], %s360_s22 }
  0xf5   : > { %p445_p1 = pnand %p448_p0, %p654_p8 }
  0xf7   : > { %p446_p2 = pneg %p445_p1 }
  0xf9   : > { %552 = dma.done.wait (%p446_p2), %s361_s24, 256  }
  0xfa   : > { %554 = vsyncadd (%p446_p2), %s361_s24, 4294967040  ;;  %s17_s20 = sadd.s32 1, %s577_s20   ;;  %s722_s15 = smov %s561_s16 }
  0xfb   : > { %p14_p3 = scmp.ge.s32.totalorder %s17_s20, 4   ;;  %s723_s16 = smov %s565_s17 }
  0xfc   : > { %s724_s17 = smov %s660_s28  ;;  %s725_s18 = smov %s573_s19 }
  0xfd   : > { %s726_s19 = smov %s728_s23  ;;  %16 = sbr.rel (!%p14_p3) target bundleno = 4 (0x4), region = 71 }
 0x102   :  { %366 = vsyncpa [#allocation3], 1 }
 0x103   :  { %368 = vsyncpa [#allocation3 + $0x1], 1 }

</bundles_post_ra>
